<compile_context>
chip_gen: v7x
topology: tpu7x:2x2x1
jax: 0.10.0
libtpu: 0.0.40
codegen_flags: <defaults>
</compile_context>

<pallas_src>
import math

import jax
import jax.numpy as jnp
import numpy as np
from jax.experimental import pallas as pl
from jax.experimental.pallas import tpu as pltpu

HC_BETA = 0.5
HC_GAMMA = -0.1
HC_ZETA = 1.1
HC_THRESHOLD = 0.34
OFFSET = math.log(-HC_GAMMA / HC_ZETA) * HC_BETA  # beta * log(-gamma/zeta)
# sigmoid(OFFSET - theta) < thr   <=>   theta > OFFSET - log(thr/(1-thr))
THETA_CUTOFF = OFFSET - math.log(HC_THRESHOLD / (1.0 - HC_THRESHOLD))


def _bbq_kernel(theta_ref, mu_ref, sigma_ref, vmu_ref, vsigma_ref):
    # theta_ref: SMEM (4,) f32 — [0] is a dummy (gate forced to 1),
    #            [1..3] are theta_2, theta_3, theta_4.
    # mu_ref / sigma_ref / vmu_ref / vsigma_ref: VMEM (4, N) f32.
    g2 = (theta_ref[1] > THETA_CUTOFF).astype(jnp.float32)
    g3 = (theta_ref[2] > THETA_CUTOFF).astype(jnp.float32)
    g4 = (theta_ref[3] > THETA_CUTOFF).astype(jnp.float32)

    # Gate column [1, g2, g3, g4]^T built on the VPU.
    row = jax.lax.broadcasted_iota(jnp.int32, (4, 1), 0)
    gates = jnp.where(row == 1, g2,
            jnp.where(row == 2, g3,
            jnp.where(row == 3, g4, jnp.float32(1.0))))          # (4, 1)

    # diag(gates) @ x  ==  row-wise scale -> broadcast multiply.
    vmu_ref[...] = mu_ref[...] * gates
    vsigma_ref[...] = sigma_ref[...] * gates


def bayesian_bits_forward(theta, alpha_mu, alpha_sigma):
    """theta: (4,) f32 (element 0 ignored); alpha_mu/alpha_sigma: (4, N) f32."""
    rows, n = alpha_mu.shape
    assert rows == 4 and alpha_sigma.shape == (4, n) and theta.shape == (4,)

    v_mu, v_sigma = pl.pallas_call(
        _bbq_kernel,
        out_shape=(jax.ShapeDtypeStruct((4, n), jnp.float32),
                   jax.ShapeDtypeStruct((4, n), jnp.float32)),
        in_specs=[
            pl.BlockSpec(memory_space=pltpu.MemorySpace.SMEM),   # theta scalars
            pl.BlockSpec((4, n), lambda: (0, 0)),                # alpha_mu
            pl.BlockSpec((4, n), lambda: (0, 0)),                # alpha_sigma
        ],
        out_specs=(pl.BlockSpec((4, n), lambda: (0, 0)),
                   pl.BlockSpec((4, n), lambda: (0, 0))),
    )(theta.astype(jnp.float32),
      alpha_mu.astype(jnp.float32),
      alpha_sigma.astype(jnp.float32))

    return v_mu, v_sigma


def _reference(theta, alpha_mu, alpha_sigma):
    # Pure-JAX reference mirroring the PyTorch eval-mode forward exactly.
    gates = (jax.nn.sigmoid(OFFSET - theta) < HC_THRESHOLD).astype(jnp.float32)
    gates = gates.at[0].set(1.0)
    gate_matrix = jnp.diag(gates)
    return gate_matrix @ alpha_mu, gate_matrix @ alpha_sigma


if __name__ == "__main__":
    key = jax.random.PRNGKey(0)
    k_mu, k_sigma = jax.random.split(key)

    N = 128
    # theta[0] is a dummy (gate forced to 1).  Mixed signs exercise both the
    # open and closed gate branches.  Module defaults are 6.0.
    theta = jnp.array([0.0, 6.0, -6.0, 6.0], dtype=jnp.float32)

    alpha_mu = jax.random.normal(k_mu, (4, N), dtype=jnp.float32)
    alpha_sigma = jax.nn.softplus(
        jax.random.normal(k_sigma, (4, N), dtype=jnp.float32))

    v_mu, v_sigma = bayesian_bits_forward(theta, alpha_mu, alpha_sigma)
    jax.block_until_ready((v_mu, v_sigma))

    ref_mu, ref_sigma = _reference(theta, alpha_mu, alpha_sigma)
    np.testing.assert_allclose(np.asarray(v_mu), np.asarray(ref_mu),
                               rtol=1e-6, atol=1e-6)
    np.testing.assert_allclose(np.asarray(v_sigma), np.asarray(ref_sigma),
                               rtol=1e-6, atol=1e-6)

    print("KERNEL_OK")
</pallas_src>

<mosaic_0001>
module attributes {stable_mosaic.version = 11 : i64} {
  func.func @_bbq_kernel(%arg0: memref<4xf32, #tpu.memory_space<smem>>, %arg1: memref<4x128xf32, #tpu.memory_space<vmem>>, %arg2: memref<4x128xf32, #tpu.memory_space<vmem>>, %arg3: memref<4x128xf32, #tpu.memory_space<vmem>>, %arg4: memref<4x128xf32, #tpu.memory_space<vmem>>) attributes {dimension_semantics = [], scalar_prefetch = 0 : i64, scratch_operands = 0 : i64, tpu.core_type = #tpu.core_type<tc>} {
    %c1 = arith.constant 1 : index
    %0 = memref.load %arg0[%c1] : memref<4xf32, #tpu.memory_space<smem>>
    %cst = arith.constant -0.535653412 : f32
    %1 = arith.cmpf ogt, %0, %cst : f32
    %2 = arith.extui %1 : i1 to i32
    %3 = arith.sitofp %2 : i32 to f32
    %c2 = arith.constant 2 : index
    %4 = memref.load %arg0[%c2] : memref<4xf32, #tpu.memory_space<smem>>
    %cst_0 = arith.constant -0.535653412 : f32
    %5 = arith.cmpf ogt, %4, %cst_0 : f32
    %6 = arith.extui %5 : i1 to i32
    %7 = arith.sitofp %6 : i32 to f32
    %c3 = arith.constant 3 : index
    %8 = memref.load %arg0[%c3] : memref<4xf32, #tpu.memory_space<smem>>
    %cst_1 = arith.constant -0.535653412 : f32
    %9 = arith.cmpf ogt, %8, %cst_1 : f32
    %10 = arith.extui %9 : i1 to i32
    %11 = arith.sitofp %10 : i32 to f32
    %12 = tpu.iota {dimensions = array<i32: 0>} : vector<4x1xi32>
    %c1_i32 = arith.constant 1 : i32
    %13 = vector.broadcast %c1_i32 : i32 to vector<4x1xi32>
    %14 = arith.cmpi eq, %12, %13 : vector<4x1xi32>
    %c2_i32 = arith.constant 2 : i32
    %15 = vector.broadcast %c2_i32 : i32 to vector<4x1xi32>
    %16 = arith.cmpi eq, %12, %15 : vector<4x1xi32>
    %c3_i32 = arith.constant 3 : i32
    %17 = vector.broadcast %c3_i32 : i32 to vector<4x1xi32>
    %18 = arith.cmpi eq, %12, %17 : vector<4x1xi32>
    %cst_2 = arith.constant 1.000000e+00 : f32
    %19 = vector.broadcast %11 : f32 to vector<4x1xf32>
    %20 = vector.broadcast %cst_2 : f32 to vector<4x1xf32>
    %21 = arith.select %18, %19, %20 : vector<4x1xi1>, vector<4x1xf32>
    %22 = vector.broadcast %7 : f32 to vector<4x1xf32>
    %23 = arith.select %16, %22, %21 : vector<4x1xi1>, vector<4x1xf32>
    %24 = vector.broadcast %3 : f32 to vector<4x1xf32>
    %25 = arith.select %14, %24, %23 : vector<4x1xi1>, vector<4x1xf32>
    %c0 = arith.constant 0 : index
    %c0_3 = arith.constant 0 : index
    %26 = vector.load %arg1[%c0, %c0_3] : memref<4x128xf32, #tpu.memory_space<vmem>>, vector<4x128xf32>
    %27 = vector.broadcast %25 : vector<4x1xf32> to vector<4x128xf32>
    %28 = arith.mulf %26, %27 : vector<4x128xf32>
    %c0_4 = arith.constant 0 : index
    %c0_5 = arith.constant 0 : index
    %29 = vector.load %arg3[%c0_4, %c0_5] : memref<4x128xf32, #tpu.memory_space<vmem>>, vector<4x128xf32>
    tpu.vector_store %arg3[%c0_4, %c0_5], %28 {strides = array<i32>} : memref<4x128xf32, #tpu.memory_space<vmem>>, vector<4x128xf32>,
    %c0_6 = arith.constant 0 : index
    %c0_7 = arith.constant 0 : index
    %30 = vector.load %arg2[%c0_6, %c0_7] : memref<4x128xf32, #tpu.memory_space<vmem>>, vector<4x128xf32>
    %31 = vector.broadcast %25 : vector<4x1xf32> to vector<4x128xf32>
    %32 = arith.mulf %30, %31 : vector<4x128xf32>
    %c0_8 = arith.constant 0 : index
    %c0_9 = arith.constant 0 : index
    %33 = vector.load %arg4[%c0_8, %c0_9] : memref<4x128xf32, #tpu.memory_space<vmem>>, vector<4x128xf32>
    tpu.vector_store %arg4[%c0_8, %c0_9], %32 {strides = array<i32>} : memref<4x128xf32, #tpu.memory_space<vmem>>, vector<4x128xf32>,
    return
  }
}

</mosaic_0001>

<bundles_post_ra>
// kernel: tpu_custom_call.1
= control target key start
LH: loop header
LB: loop body
LE: loop exit
PB: predicated region body
PF: predicated region fallthrough
CT: control target
= control target key end

     0   :  { %10 = vsyncpa [#allocation5], 0  ;;  %s271_s0 = inlined_call_operand.hbm [shape: f32[4], index: 0, kind: input, shape index: {}]   ;;  %s272_s1 = inlined_call_operand.hbm [shape: f32[4,128], index: 1, kind: input, shape index: {}]   ;;  %s273_s2 = inlined_call_operand.vmem [shape: f32[4,128], index: 2, kind: input, shape index: {}]   ;;  %s274_s3 = inlined_call_operand.hbm [shape: f32[4,128], index: 3, kind: output, shape index: {0}]   ;;  %s275_s4 = inlined_call_operand.hbm [shape: f32[4,128], index: 4, kind: output, shape index: {1}]  }
   0x1   :  { %11 = vsyncpa [#allocation3], 0 }
   0x2   :  { %12 = vsyncpa [#allocation4], 0 }
   0x3   :  { %13 = vsyncpa [#allocation9], 0  ;;  %s107_s17 = scalar_lea.hbm %s271_s0, 16 }
   0x4   :  { %p108_p0 = scmp.ne.s32.totalorder %s271_s0, %s107_s17  ;;  %p111_p1 = scmp.lt.u32.totalorder %s107_s17, %s271_s0 }
   0x6   :  { %p113_p2 = pnand %p111_p1, %p108_p0 }
   0x8   :  { %116 = shalt.err (!%p113_p2)
}
   0x9   :  { %s191_s22 = smov [#allocation2]   ;;  %s192_s25 = smov [#allocation6]  }
   0xa   :  { %21 = dma.hbm_to_smem %s271_s0, 16, %s191_s22, [#allocation5]  }
   0xb   :  { %s28_s26 = sshll.u32 %s192_s25, 4  ;;  %s117_s29 = scalar_lea.hbm %s272_s1, 64  ;;  %s29_s26 = int_to_ptr.vmem [resolvable:$true] %s28_s26 }
   0xc   :  { %p118_p3 = scmp.ne.s32.totalorder %s272_s1, %s117_s29  ;;  %p121_p4 = scmp.lt.u32.totalorder %s117_s29, %s272_s1 }
   0xe   :  { %p123_p5 = pnand %p121_p4, %p118_p3 }
  0x10   :  { %126 = shalt.err (!%p123_p5)
}
  0x11   :  { %s127_s8 = scalar_lea.vmem %s29_s26, 64  ;;  %p132_p7 = scmp.lt.s32.totalorder %s29_s26, %s29_s26 }
  0x12   :  { %p128_p6 = scmp.ne.s32.totalorder %s29_s26, %s127_s8  ;;  %p133_p8 = scmp.lt.s32.totalorder %s127_s8, %s127_s8 }
  0x14   :  { %p134_p9 = por %p133_p8, %p132_p7 }
  0x16   :  { %p135_p10 = pnand %p134_p9, %p128_p6 }
  0x18   :  { %138 = shalt.err (!%p135_p10)
}
  0x19   :  { %31 = dma.hbm_to_vmem [thread:$0]  %s272_s1, 64, %s29_s26, [#allocation3]  }
  0x1a   :  { %183 = dma.done.wait [#allocation5], 16  }
  0x1b   :  { %184 = vsyncadd [#allocation5], 4294967280 }
  0x1c   :  { %185 = dma.done.wait [#allocation3], 64  }
  0x1d   :  { %186 = vsyncadd [#allocation3], 4294967232 }
  0x1e   :  { %40 = sfence }
  0x1f   :  { %s100_s10 = sld [smem:[#allocation2 + $0x1]]  ;;  %s101_s11 = sld [smem:[#allocation2 + $0x2]]  ;;  %v53_v0 = vlaneseq  ;;  %v64_v6 = vld [vmem:[#allocation6] sm:$0xf]  ;;  %v67_v7 = vld [vmem:[%s273_s2] sm:$0xf] }
  0x20   :  { %s102_s12 = sld [smem:[#allocation2 + $0x3]]  ;;  %s193_s20 = smov [#allocation7]  }
  0x21   :  { %v54_v1 = vshrl.u32 %v53_v0, 7  ;;  %s76_s21 = sshll.u32 %s193_s20, 4  ;;  %s194_s22 = smov [#allocation8]   ;;  %s77_s21 = int_to_ptr.vmem [resolvable:$true] %s76_s21 }
  0x22   :  { %s86_s23 = sshll.u32 %s194_s22, 4  ;;  %s139_s24 = scalar_lea.vmem %s77_s21, 64  ;;  %s87_s23 = int_to_ptr.vmem [resolvable:$true] %s86_s23 }
  0x23   :  { %vm57_vm0 = vcmp.eq.s32.totalorder %v54_v1, 3  ;;  %vm56_vm1 = vcmp.eq.s32.totalorder %v54_v1, 2  ;;  %vm55_vm2 = vcmp.eq.s32.totalorder %v54_v1, 1  ;;  %p140_p0 = scmp.ne.s32.totalorder %s77_s21, %s139_s24  ;;  %p144_p1 = scmp.lt.s32.totalorder %s77_s21, %s77_s21 }
  0x24   :  { %p145_p2 = scmp.lt.s32.totalorder %s139_s24, %s139_s24 }
  0x25   :  { %p42_p11 = scmp.gt.f32.partialorder %s100_s10, -0.5356534  ;;  %p46_p12 = scmp.gt.f32.partialorder %s101_s11, -0.5356534 }
  0x26   :  { %p50_p13 = scmp.gt.f32.partialorder %s102_s12, -0.5356534  ;;  %p146_p3 = por %p145_p2, %p144_p1 }
  0x27   :  { %s43_s13 = scalar_select %p42_p11, 1, 0 }
  0x28   :  { %s47_s14 = scalar_select %p46_p12, 1, 0 }
  0x29   :  { %s44_s15 = scvt.s32.f32 %s43_s13  ;;  %p147_p4 = pnand %p146_p3, %p140_p0 }
  0x2a   :  { %s48_s16 = scvt.s32.f32 %s47_s14 }
  0x2b   :  { %s51_s17 = scalar_select %p50_p13, 1, 0  ;;  %v62_v4 = vstv %s44_s15 }
  0x2c   :  { %v60_v2 = vstv %s48_s16 }
  0x2d   :  { %s52_s18 = scvt.s32.f32 %s51_s17 }
  0x2f   :  { %v58_v3 = vstv %s52_s18 }
  0x30   :  { %v59_v5 = vsel %vm57_vm0, %v58_v3, 1.0 }
  0x31   :  { %v61_v8 = vsel %vm56_vm1, %v60_v2, %v59_v5 }
  0x32   :  { %v63_v9 = vsel %vm55_vm2, %v62_v4, %v61_v8 }
  0x33   :  { %v65_v10 = vmul.f32 %v64_v6, %v63_v9  ;;  %v68_v11 = vmul.f32 %v67_v7, %v63_v9 }
  0x35   :  { %66 = vst [vmem:[#allocation7] sm:$0xf] %v65_v10  ;;  %69 = vst [vmem:[#allocation8] sm:$0xf] %v68_v11 }
  0x36   :  { %150 = shalt.err (!%p147_p4)
}
  0x37   :  { %s151_s26 = scalar_lea.hbm %s274_s3, 64 }
  0x38   :  { %p152_p5 = scmp.ne.s32.totalorder %s274_s3, %s151_s26  ;;  %p155_p6 = scmp.lt.u32.totalorder %s151_s26, %s274_s3 }
  0x3a   :  { %p157_p7 = pnand %p155_p6, %p152_p5 }
  0x3c   :  { %160 = shalt.err (!%p157_p7)
}
  0x3d   :  { %79 = dma.vmem_to_hbm [thread:$0]  %s77_s21, 64, %s274_s3, [#allocation4]  }
  0x3e   :  { %s161_s7 = scalar_lea.vmem %s87_s23, 64  ;;  %p166_p9 = scmp.lt.s32.totalorder %s87_s23, %s87_s23 }
  0x3f   :  { %p162_p8 = scmp.ne.s32.totalorder %s87_s23, %s161_s7  ;;  %p167_p10 = scmp.lt.s32.totalorder %s161_s7, %s161_s7 }
  0x41   :  { %p168_p11 = por %p167_p10, %p166_p9 }
  0x43   :  { %p169_p12 = pnand %p168_p11, %p162_p8 }
  0x45   :  { %172 = shalt.err (!%p169_p12)
}
  0x46   :  { %s173_s9 = scalar_lea.hbm %s275_s4, 64 }
  0x47   :  { %p174_p13 = scmp.ne.s32.totalorder %s275_s4, %s173_s9  ;;  %p177_p0 = scmp.lt.u32.totalorder %s173_s9, %s275_s4 }
  0x49   :  { %p179_p1 = pnand %p177_p0, %p174_p13 }
  0x4b   :  { %182 = shalt.err (!%p179_p1)
}
  0x4c   :  { %89 = dma.vmem_to_hbm [thread:$0]  %s87_s23, 64, %s275_s4, [#allocation9]  }
  0x4d   :  { %187 = dma.done.wait [#allocation4], 64  }
  0x4e   :  { %188 = vsyncadd [#allocation4], 4294967232 }
  0x4f   :  { %189 = dma.done.wait [#allocation9], 64  }
  0x50   :  { %190 = vsyncadd [#allocation9], 4294967232 }
  0x51   :  { %96 = vsyncpa [#allocation3], 1 }
  0x52   :  { %97 = vsyncpa [#allocation4], 1 }
  0x53   :  { %98 = vsyncpa [#allocation9], 1 }
  0x54   :  { %99 = vsyncpa [#allocation5], 1 }

</bundles_post_ra>
